<compile_context>
chip_gen: v7x
topology: tpu7x:2x2x1
jax: 0.10.0
libtpu: 0.0.40
codegen_flags: <defaults>
</compile_context>

<pallas_src>
import jax
import jax.numpy as jnp
from jax import lax
from jax.experimental import pallas as pl
from jax.experimental.pallas import tpu as pltpu


def _pick_batch_tile(N, L, L_out, stride):
    """How many samples to pack onto the lane axis per grid step."""
    if stride > 1 and L % stride != 0:
        return 1  # packed pre-striding needs L % stride == 0; 1 sample/step then
    LANE_CAP = 4096  # keep per-step activation slabs comfortably inside VMEM
    if N * L <= LANE_CAP:
        return N  # whole batch in one lane-dense grid step
    bt = 1
    for c in range(1, N + 1):
        if (N % c == 0 and c * L <= LANE_CAP
                and (c * L) % 128 == 0 and (c * L_out) % 128 == 0):
            bt = c
    return bt


def make_branch0(N, L, Cin, Cinter, Cout, dilation, stride, Bt,
                 out_dtype=jnp.float32):
    """Returns callable (x_pack, W1f, b2, W2f, b3, W3) -> (Cout, N*L_out)."""
    d = dilation
    L_out = (L - 1) // stride + 1       # padding == dilation, kernel = 3
    W = Bt * L                          # packed input lanes per step
    Wout = Bt * L_out                   # packed output lanes per step

    def kernel(x_ref, w1_ref, b2_ref, w2_ref, b3_ref, w3_ref, o_ref, hpad_ref):
        # x_ref: (Cin, Bt*L) -- batch packed on the lane axis (lane-dense).
        x = x_ref[...]

        # --- cv1 (1x1, BN2 scale folded into W1) + bias + ReLU -----------------
        h = jnp.maximum(
            jnp.dot(w1_ref[...], x, preferred_element_type=jnp.float32)
            + b2_ref[...],
            0.0,
        )                                                       # (Cinter, Bt*L)

        # --- zero-padded activation in persistent VMEM scratch (halo = d) -----
        # Halos re-zeroed every step: scratch persists across grid steps and is
        # per-core under "parallel" megacore sharding.
        zhalo = jnp.zeros((Cinter, d), jnp.float32)
        hpad_ref[:, 0:d] = zhalo                                # global left halo
        hpad_ref[:, d + W:d + W + d] = zhalo                    # global right halo
        hpad_ref[:, d:d + W] = h                                # interior

        # --- per-sample boundary masks (only needed when Bt > 1) --------------
        if Bt > 1:
            q = lax.broadcasted_iota(jnp.int32, (Cinter, Wout), 1)
            pos = (q % L_out) * stride          # centre-tap input position
            m_left = pos >= d                   # tap 0 reads pos - d
            m_right = pos < (L - d)             # tap 2 reads pos + d

        def tap(k):
            if stride == 1:
                return hpad_ref[:, k * d:k * d + Wout]
            # pre-stride: only the kept output columns are ever computed
            full = hpad_ref[:, k * d:k * d + (Wout - 1) * stride + 1]
            return full[:, ::stride]

        t0, t1, t2 = tap(0), tap(1), tap(2)
        if Bt > 1:
            t0 = jnp.where(m_left, t0, 0.0)
            t2 = jnp.where(m_right, t2, 0.0)

        # --- cv2 (k=3, dilation d, BN3 scale folded): 3 accumulating matmuls --
        g = jnp.dot(w2_ref[0], t0, preferred_element_type=jnp.float32)
        g = g + jnp.dot(w2_ref[1], t1, preferred_element_type=jnp.float32)
        g = g + jnp.dot(w2_ref[2], t2, preferred_element_type=jnp.float32)
        g = jnp.maximum(g + b3_ref[...], 0.0)                   # (Cinter, Bt*L_out)

        # --- cv3 (1x1), lane-dense output store --------------------------------
        out = jnp.dot(w3_ref[...], g, preferred_element_type=jnp.float32)
        o_ref[...] = out.astype(o_ref.dtype)

    grid_spec = pltpu.PrefetchScalarGridSpec(
        num_scalar_prefetch=0,
        grid=(N // Bt,),
        in_specs=[
            pl.BlockSpec((Cin, W), lambda b: (0, b)),               # x, batch-packed
            pl.BlockSpec((Cinter, Cin), lambda b: (0, 0)),          # W1 (BN2-folded)
            pl.BlockSpec((Cinter, 1), lambda b: (0, 0)),            # bn2 shift
            pl.BlockSpec((3, Cinter, Cinter), lambda b: (0, 0, 0)),  # W2 per tap (BN3-folded)
            pl.BlockSpec((Cinter, 1), lambda b: (0, 0)),            # bn3 shift
            pl.BlockSpec((Cout, Cinter), lambda b: (0, 0)),         # W3
        ],
        out_specs=pl.BlockSpec((Cout, Wout), lambda b: (0, b)),
        scratch_shapes=[pltpu.VMEM((Cinter, W + 2 * d), jnp.float32)],
    )

    return pl.pallas_call(
        kernel,
        out_shape=jax.ShapeDtypeStruct((Cout, N * L_out), out_dtype),
        grid_spec=grid_spec,
        compiler_params=pltpu.CompilerParams(dimension_semantics=("parallel",)),
    )


def branch0_forward(x_ncl, params, dilation, stride):
    """x_ncl: (N, Cin, L) PyTorch-style NCW input. Returns (N, Cout, L_out) NCW."""
    (w1, g2, be2, m2, v2, w2, g3, be3, m3, v3, w3, eps) = params
    N, Cin, L = x_ncl.shape
    Cinter = w1.shape[0]
    Cout = w3.shape[0]
    L_out = (L - 1) // stride + 1

    # Fold BN (inference semantics) into the conv weights; only bias stays in-kernel.
    s2 = g2 / jnp.sqrt(v2 + eps)
    b2 = be2 - m2 * s2
    s3 = g3 / jnp.sqrt(v3 + eps)
    b3 = be3 - m3 * s3

    W1f = w1[:, :, 0] * s2[:, None]                          # (Cinter, Cin)
    W2f = jnp.moveaxis(w2 * s3[:, None, None], 2, 0)         # (3, Cinter, Cinter)
    W3 = w3[:, :, 0]                                         # (Cout, Cinter)

    Bt = _pick_batch_tile(N, L, L_out, stride)
    # Layout plumbing (wrapper-side, not compute): batch packed onto the lane axis.
    x_pack = jnp.transpose(x_ncl, (1, 0, 2)).reshape(Cin, N * L)

    call = make_branch0(N, L, Cin, Cinter, Cout, dilation, stride, Bt, x_ncl.dtype)
    out_pack = call(
        x_pack,
        W1f, b2.reshape(Cinter, 1),
        W2f, b3.reshape(Cinter, 1),
        W3,
    )                                                        # (Cout, N*L_out)
    return jnp.transpose(out_pack.reshape(Cout, N, L_out), (1, 0, 2))


def branch0_reference(x_ncl, params, dilation, stride):
    """Pure-JAX reference mirroring the PyTorch module (BN in eval mode)."""
    (w1, g2, be2, m2, v2, w2, g3, be3, m3, v3, w3, eps) = params
    dn = ("NCH", "OIH", "NCH")

    def bn(x, g, b, m, v):
        return (x - m[None, :, None]) / jnp.sqrt(v[None, :, None] + eps) \
            * g[None, :, None] + b[None, :, None]

    y = lax.conv_general_dilated(x_ncl, w1, (1,), "VALID", dimension_numbers=dn)
    y = jnp.maximum(bn(y, g2, be2, m2, v2), 0.0)
    y = lax.conv_general_dilated(
        y, w2, (stride,), [(dilation, dilation)],
        rhs_dilation=(dilation,), dimension_numbers=dn)
    y = jnp.maximum(bn(y, g3, be3, m3, v3), 0.0)
    y = lax.conv_general_dilated(y, w3, (1,), "VALID", dimension_numbers=dn)
    return y


if __name__ == "__main__":
    # module config: branch0(in_channels=8, out_channels=16, dilation=2, stride=1, splits=2)
    N, Cin, L = 2, 8, 16
    splits = 2
    Cinter = Cin // splits          # 4
    Cout = 16
    dilation = 2
    stride = 1
    eps = 1e-5

    key = jax.random.PRNGKey(0)
    ks = jax.random.split(key, 12)

    x = jax.random.normal(ks[0], (N, Cin, L), jnp.float32)

    w1 = jax.random.normal(ks[1], (Cinter, Cin, 1), jnp.float32) * 0.2
    w2 = jax.random.normal(ks[2], (Cinter, Cinter, 3), jnp.float32) * 0.2
    w3 = jax.random.normal(ks[3], (Cout, Cinter, 1), jnp.float32) * 0.2

    g2 = 1.0 + 0.1 * jax.random.normal(ks[4], (Cinter,), jnp.float32)
    be2 = 0.1 * jax.random.normal(ks[5], (Cinter,), jnp.float32)
    m2 = 0.1 * jax.random.normal(ks[6], (Cinter,), jnp.float32)
    v2 = 1.0 + 0.1 * jax.nn.softplus(jax.random.normal(ks[7], (Cinter,), jnp.float32))

    g3 = 1.0 + 0.1 * jax.random.normal(ks[8], (Cinter,), jnp.float32)
    be3 = 0.1 * jax.random.normal(ks[9], (Cinter,), jnp.float32)
    m3 = 0.1 * jax.random.normal(ks[10], (Cinter,), jnp.float32)
    v3 = 1.0 + 0.1 * jax.nn.softplus(jax.random.normal(ks[11], (Cinter,), jnp.float32))

    params = (w1, g2, be2, m2, v2, w2, g3, be3, m3, v3, w3, eps)

    out = branch0_forward(x, params, dilation, stride)
    out = jax.block_until_ready(out)

    ref = jax.block_until_ready(branch0_reference(x, params, dilation, stride))
    assert out.shape == ref.shape, (out.shape, ref.shape)
    assert jnp.allclose(out, ref, atol=1e-4, rtol=1e-4), \
        float(jnp.max(jnp.abs(out - ref)))

    print("KERNEL_OK")
</pallas_src>

<mosaic_0001>
module attributes {stable_mosaic.version = 11 : i64} {
  func.func @kernel(%arg0: i32, %arg1: memref<8x32xf32, #tpu.memory_space<vmem>>, %arg2: memref<4x8xf32, #tpu.memory_space<vmem>>, %arg3: memref<4x1xf32, #tpu.memory_space<vmem>>, %arg4: memref<3x4x4xf32, #tpu.memory_space<vmem>>, %arg5: memref<4x1xf32, #tpu.memory_space<vmem>>, %arg6: memref<16x4xf32, #tpu.memory_space<vmem>>, %arg7: memref<16x32xf32, #tpu.memory_space<vmem>>, %arg8: memref<4x36xf32, #tpu.memory_space<vmem>>) attributes {dimension_semantics = [#tpu.dimension_semantics<parallel>], iteration_bounds = array<i64: 1>, scalar_prefetch = 0 : i64, scratch_operands = 1 : i64, tpu.core_type = #tpu.core_type<tc>, window_params = [{transform_indices = @transform_0, window_bounds = array<i64: 8, 32>}, {pipeline_mode = #tpu.pipeline_mode<synchronous>, transform_indices = @transform_1, window_bounds = array<i64: 4, 8>}, {pipeline_mode = #tpu.pipeline_mode<synchronous>, transform_indices = @transform_2, window_bounds = array<i64: 4, 1>}, {pipeline_mode = #tpu.pipeline_mode<synchronous>, transform_indices = @transform_3, window_bounds = array<i64: 3, 4, 4>}, {pipeline_mode = #tpu.pipeline_mode<synchronous>, transform_indices = @transform_4, window_bounds = array<i64: 4, 1>}, {pipeline_mode = #tpu.pipeline_mode<synchronous>, transform_indices = @transform_5, window_bounds = array<i64: 16, 4>}, {transform_indices = @transform_6, window_bounds = array<i64: 16, 32>}]} {
    %c0 = arith.constant 0 : index
    %c0_0 = arith.constant 0 : index
    %0 = vector.load %arg1[%c0, %c0_0] : memref<8x32xf32, #tpu.memory_space<vmem>>, vector<8x32xf32>
    %c0_1 = arith.constant 0 : index
    %c0_2 = arith.constant 0 : index
    %1 = vector.load %arg2[%c0_1, %c0_2] : memref<4x8xf32, #tpu.memory_space<vmem>>, vector<4x8xf32>
    %cst = arith.constant dense<0.000000e+00> : vector<4x32xf32>
    %2 = tpu.matmul %1, %0, %cst {dimension_numbers = #tpu.dot_dimension_numbers<[1], [0], [0], [1], [0, 0, 1, 1], [], []>} : vector<4x8xf32>, vector<8x32xf32>, vector<4x32xf32> -> vector<4x32xf32>
    %c0_3 = arith.constant 0 : index
    %c0_4 = arith.constant 0 : index
    %3 = vector.load %arg3[%c0_3, %c0_4] : memref<4x1xf32, #tpu.memory_space<vmem>>, vector<4x1xf32>
    %4 = vector.broadcast %3 : vector<4x1xf32> to vector<4x32xf32>
    %5 = arith.addf %2, %4 : vector<4x32xf32>
    %cst_5 = arith.constant 0.000000e+00 : f32
    %6 = vector.broadcast %cst_5 : f32 to vector<4x32xf32>
    %7 = arith.maximumf %5, %6 : vector<4x32xf32>
    %cst_6 = arith.constant 0.000000e+00 : f32
    %8 = vector.broadcast %cst_6 : f32 to vector<4x2xf32>
    %c0_7 = arith.constant 0 : index
    %c0_8 = arith.constant 0 : index
    %9 = vector.load %arg8[%c0_7, %c0_8] : memref<4x36xf32, #tpu.memory_space<vmem>>, vector<4x2xf32>
    tpu.vector_store %arg8[%c0_7, %c0_8], %8 {strides = array<i32>} : memref<4x36xf32, #tpu.memory_space<vmem>>, vector<4x2xf32>,
    %c0_9 = arith.constant 0 : index
    %c34 = arith.constant 34 : index
    %10 = vector.load %arg8[%c0_9, %c34] : memref<4x36xf32, #tpu.memory_space<vmem>>, vector<4x2xf32>
    tpu.vector_store %arg8[%c0_9, %c34], %8 {strides = array<i32>} : memref<4x36xf32, #tpu.memory_space<vmem>>, vector<4x2xf32>,
    %c0_10 = arith.constant 0 : index
    %c2 = arith.constant 2 : index
    %11 = vector.load %arg8[%c0_10, %c2] : memref<4x36xf32, #tpu.memory_space<vmem>>, vector<4x32xf32>
    tpu.vector_store %arg8[%c0_10, %c2], %7 {strides = array<i32>} : memref<4x36xf32, #tpu.memory_space<vmem>>, vector<4x32xf32>,
    %12 = tpu.iota {dimensions = array<i32: 1>} : vector<4x32xi32>
    %c16_i32 = arith.constant 16 : i32
    %c0_i32 = arith.constant 0 : i32
    %13 = arith.cmpi eq, %c16_i32, %c0_i32 : i32
    %c1_i32 = arith.constant 1 : i32
    %14 = arith.select %13, %c1_i32, %c16_i32 : i32
    %15 = vector.broadcast %14 : i32 to vector<4x32xi32>
    %16 = arith.remsi %12, %15 : vector<4x32xi32>
    %c0_i32_11 = arith.constant 0 : i32
    %17 = vector.broadcast %c0_i32_11 : i32 to vector<4x32xi32>
    %18 = arith.cmpi ne, %16, %17 : vector<4x32xi32>
    %c0_i32_12 = arith.constant 0 : i32
    %19 = vector.broadcast %c0_i32_12 : i32 to vector<4x32xi32>
    %20 = arith.cmpi slt, %16, %19 : vector<4x32xi32>
    %c0_i32_13 = arith.constant 0 : i32
    %21 = arith.cmpi slt, %14, %c0_i32_13 : i32
    %22 = vector.broadcast %21 : i1 to vector<4x32xi1>
    %23 = vector.broadcast %22 : vector<4x32xi1> to vector<4x32xi1>
    %24 = arith.xori %20, %23 : vector<4x32xi1>
    %25 = arith.andi %24, %18 : vector<4x32xi1>
    %26 = vector.broadcast %14 : i32 to vector<4x32xi32>
    %27 = arith.addi %16, %26 : vector<4x32xi32>
    %28 = arith.select %25, %27, %16 : vector<4x32xi1>, vector<4x32xi32>
    %c1_i32_14 = arith.constant 1 : i32
    %29 = vector.broadcast %c1_i32_14 : i32 to vector<4x32xi32>
    %30 = arith.muli %28, %29 : vector<4x32xi32>
    %c2_i32 = arith.constant 2 : i32
    %31 = vector.broadcast %c2_i32 : i32 to vector<4x32xi32>
    %32 = arith.cmpi sge, %30, %31 : vector<4x32xi32>
    %c14_i32 = arith.constant 14 : i32
    %33 = vector.broadcast %c14_i32 : i32 to vector<4x32xi32>
    %34 = arith.cmpi slt, %30, %33 : vector<4x32xi32>
    %c0_15 = arith.constant 0 : index
    %c0_16 = arith.constant 0 : index
    %35 = vector.load %arg8[%c0_15, %c0_16] : memref<4x36xf32, #tpu.memory_space<vmem>>, vector<4x32xf32>
    %c0_17 = arith.constant 0 : index
    %c2_18 = arith.constant 2 : index
    %36 = vector.load %arg8[%c0_17, %c2_18] : memref<4x36xf32, #tpu.memory_space<vmem>>, vector<4x32xf32>
    %c0_19 = arith.constant 0 : index
    %c4 = arith.constant 4 : index
    %37 = vector.load %arg8[%c0_19, %c4] : memref<4x36xf32, #tpu.memory_space<vmem>>, vector<4x32xf32>
    %cst_20 = arith.constant 0.000000e+00 : f32
    %38 = vector.broadcast %cst_20 : f32 to vector<4x32xf32>
    %39 = arith.select %32, %35, %38 : vector<4x32xi1>, vector<4x32xf32>
    %cst_21 = arith.constant 0.000000e+00 : f32
    %40 = vector.broadcast %cst_21 : f32 to vector<4x32xf32>
    %41 = arith.select %34, %37, %40 : vector<4x32xi1>, vector<4x32xf32>
    %c0_22 = arith.constant 0 : index
    %c0_23 = arith.constant 0 : index
    %c0_24 = arith.constant 0 : index
    %42 = vector.load %arg4[%c0_22, %c0_23, %c0_24] : memref<3x4x4xf32, #tpu.memory_space<vmem>>, vector<1x4x4xf32>
    %43 = vector.shape_cast %42 : vector<1x4x4xf32> to vector<4x4xf32>
    %cst_25 = arith.constant dense<0.000000e+00> : vector<4x32xf32>
    %44 = tpu.matmul %43, %39, %cst_25 {dimension_numbers = #tpu.dot_dimension_numbers<[1], [0], [0], [1], [0, 0, 1, 1], [], []>} : vector<4x4xf32>, vector<4x32xf32>, vector<4x32xf32> -> vector<4x32xf32>
    %c1 = arith.constant 1 : index
    %c0_26 = arith.constant 0 : index
    %c0_27 = arith.constant 0 : index
    %45 = vector.load %arg4[%c1, %c0_26, %c0_27] : memref<3x4x4xf32, #tpu.memory_space<vmem>>, vector<1x4x4xf32>
    %46 = vector.shape_cast %45 : vector<1x4x4xf32> to vector<4x4xf32>
    %cst_28 = arith.constant dense<0.000000e+00> : vector<4x32xf32>
    %47 = tpu.matmul %46, %36, %cst_28 {dimension_numbers = #tpu.dot_dimension_numbers<[1], [0], [0], [1], [0, 0, 1, 1], [], []>} : vector<4x4xf32>, vector<4x32xf32>, vector<4x32xf32> -> vector<4x32xf32>
    %48 = arith.addf %44, %47 : vector<4x32xf32>
    %c2_29 = arith.constant 2 : index
    %c0_30 = arith.constant 0 : index
    %c0_31 = arith.constant 0 : index
    %49 = vector.load %arg4[%c2_29, %c0_30, %c0_31] : memref<3x4x4xf32, #tpu.memory_space<vmem>>, vector<1x4x4xf32>
    %50 = vector.shape_cast %49 : vector<1x4x4xf32> to vector<4x4xf32>
    %cst_32 = arith.constant dense<0.000000e+00> : vector<4x32xf32>
    %51 = tpu.matmul %50, %41, %cst_32 {dimension_numbers = #tpu.dot_dimension_numbers<[1], [0], [0], [1], [0, 0, 1, 1], [], []>} : vector<4x4xf32>, vector<4x32xf32>, vector<4x32xf32> -> vector<4x32xf32>
    %52 = arith.addf %48, %51 : vector<4x32xf32>
    %c0_33 = arith.constant 0 : index
    %c0_34 = arith.constant 0 : index
    %53 = vector.load %arg5[%c0_33, %c0_34] : memref<4x1xf32, #tpu.memory_space<vmem>>, vector<4x1xf32>
    %54 = vector.broadcast %53 : vector<4x1xf32> to vector<4x32xf32>
    %55 = arith.addf %52, %54 : vector<4x32xf32>
    %cst_35 = arith.constant 0.000000e+00 : f32
    %56 = vector.broadcast %cst_35 : f32 to vector<4x32xf32>
    %57 = arith.maximumf %55, %56 : vector<4x32xf32>
    %c0_36 = arith.constant 0 : index
    %c0_37 = arith.constant 0 : index
    %58 = vector.load %arg6[%c0_36, %c0_37] : memref<16x4xf32, #tpu.memory_space<vmem>>, vector<16x4xf32>
    %cst_38 = arith.constant dense<0.000000e+00> : vector<16x32xf32>
    %59 = tpu.matmul %58, %57, %cst_38 {dimension_numbers = #tpu.dot_dimension_numbers<[1], [0], [0], [1], [0, 0, 1, 1], [], []>} : vector<16x4xf32>, vector<4x32xf32>, vector<16x32xf32> -> vector<16x32xf32>
    %c0_39 = arith.constant 0 : index
    %c0_40 = arith.constant 0 : index
    %60 = vector.load %arg7[%c0_39, %c0_40] : memref<16x32xf32, #tpu.memory_space<vmem>>, vector<16x32xf32>
    tpu.vector_store %arg7[%c0_39, %c0_40], %59 {strides = array<i32>} : memref<16x32xf32, #tpu.memory_space<vmem>>, vector<16x32xf32>,
    return
  }
  func.func @transform_0(%arg0: i32) -> (i32, i32) {
    %c0_i32 = arith.constant 0 : i32
    %c0_i32_0 = arith.constant 0 : i32
    return %c0_i32, %arg0 : i32, i32
  }
  func.func @transform_1(%arg0: i32) -> (i32, i32) {
    %c0_i32 = arith.constant 0 : i32
    %c0_i32_0 = arith.constant 0 : i32
    %c0_i32_1 = arith.constant 0 : i32
    return %c0_i32, %c0_i32_0 : i32, i32
  }
  func.func @transform_2(%arg0: i32) -> (i32, i32) {
    %c0_i32 = arith.constant 0 : i32
    %c0_i32_0 = arith.constant 0 : i32
    %c0_i32_1 = arith.constant 0 : i32
    return %c0_i32, %c0_i32_0 : i32, i32
  }
  func.func @transform_3(%arg0: i32) -> (i32, i32, i32) {
    %c0_i32 = arith.constant 0 : i32
    %c0_i32_0 = arith.constant 0 : i32
    %c0_i32_1 = arith.constant 0 : i32
    %c0_i32_2 = arith.constant 0 : i32
    return %c0_i32, %c0_i32_0, %c0_i32_1 : i32, i32, i32
  }
  func.func @transform_4(%arg0: i32) -> (i32, i32) {
    %c0_i32 = arith.constant 0 : i32
    %c0_i32_0 = arith.constant 0 : i32
    %c0_i32_1 = arith.constant 0 : i32
    return %c0_i32, %c0_i32_0 : i32, i32
  }
  func.func @transform_5(%arg0: i32) -> (i32, i32) {
    %c0_i32 = arith.constant 0 : i32
    %c0_i32_0 = arith.constant 0 : i32
    %c0_i32_1 = arith.constant 0 : i32
    return %c0_i32, %c0_i32_0 : i32, i32
  }
  func.func @transform_6(%arg0: i32) -> (i32, i32) {
    %c0_i32 = arith.constant 0 : i32
    %c0_i32_0 = arith.constant 0 : i32
    return %c0_i32, %arg0 : i32, i32
  }
}

</mosaic_0001>

<bundles_post_ra>
// kernel: tpu_custom_call.1
= control target key start
LH: loop header
LB: loop body
LE: loop exit
PB: predicated region body
PF: predicated region fallthrough
CT: control target
= control target key end

     0   :  { %vm32_vm0 = vcmask 64512   ;;  %v572_v2 = vmov 0.0   ;;  %vm573_vm1 = vmmov 0   ;;  %s669_s0 = inlined_call_operand.vmem [shape: f32[8,32], index: 0, kind: input, shape index: {}]   ;;  %s670_s1 = inlined_call_operand.vmem [shape: f32[4,8], index: 1, kind: input, shape index: {}]   ;;  %s671_s2 = inlined_call_operand.vmem [shape: f32[4,1], index: 2, kind: input, shape index: {}]   ;;  %s672_s3 = inlined_call_operand.vmem [shape: f32[3,4,4], index: 3, kind: input, shape index: {}]   ;;  %s673_s4 = inlined_call_operand.vmem [shape: f32[4,1], index: 4, kind: input, shape index: {}]   ;;  %s674_s5 = inlined_call_operand.vmem [shape: f32[16,4], index: 5, kind: input, shape index: {}]   ;;  %s675_s6 = inlined_call_operand.hbm [shape: f32[16,32], index: 6, kind: output, shape index: {}]  }
   0x1   :  { %v24_v0 = vld [vmem:[%s669_s0] sm:$0xff]  ;;  %513 = vmatprep.subr.mxu0 %v572_v2  ;;  %515 = vmatprep.mubr.msk.f32.mxu0 %vm573_vm1, %v572_v2 }
   0x2   :  { %v25_v1 = vld [vmem:[%s670_s1] sm:$0xf] }
   0x3   :  { %v26_v3 = vld [vmem:[%s671_s2] sm:$0xf] }
   0x4   :  { %11 = vsyncpa [#allocation4], 0  ;;  %514 = vmatpush3.msra.mxu0 %v24_v0  ;;  %v574_v4 = vmov 0   ;;  %518 = vmatprep.subr.mxu1 %v572_v2  ;;  %vm107_vm2 = vcmask 11264   ;;  %vm109_vm3 = vcmask 290064   ;;  %s575_s0 = smov 2   ;;  %v117_v11 = vlaneseq }
   0x5   :  { %547 = vset.pattern.permute.xlu0 %v574_v4  ;;  %516 = vmatmul.mubr.msk.f32.vlgmr.msra.gmra.mrb[0].mxu0 %vm32_vm0, %v25_v1  ;;  %108 = vst.msk [vmem:[#allocation2] sm:$0xf] %vm107_vm2, %v572_v2  ;;  %v377_v10 = vld [vmem:[%s673_s4] sm:$0xf]  ;;  %vm115_vm4 = vcmask 273424   ;;  %vm149_vm6 = vcmask 1043456  }
   0x6   :  { %29 = vperm.xlu0 %547, %v26_v3   ;;  %523 = vmatprep.subr.mxu0 %v572_v2  ;;  %110 = vst.msk [vmem:[#allocation2] sm:$0xf] %vm109_vm3, %v572_v2  ;;  %v118_v12 = vand.u32 127, %v117_v11  ;;  %vm145_vm7 = vcmask 31744   ;;  %v140_v16 = vld [vmem:[%s672_s3] sm:$0xf] }
   0x7   :  { %520 = vmatprep.mubr.msk.f32.mxu1 %vm573_vm1, %v572_v2  ;;  %525 = vmatprep.mubr.msk.f32.mxu0 %vm573_vm1, %v572_v2  ;;  %s576_s29 = smov 126   ;;  %s577_s4 = smov 124   ;;  %v491_v18 = vld [vmem:[%s672_s3 + $0x4] sm:$0xf]  ;;  %v496_v21 = vld [vmem:[%s672_s3 + $0x8] sm:$0xf] }
   0x8   :  { %v123_v14 = vand.u32 15, %v118_v12  ;;  %v385_v23 = vld [vmem:[%s674_s5] sm:$0xff]  ;;  %v386_v35 = vld [vmem:[%s674_s5 + $0x8] sm:$0xff]  ;;  %s578_s13 = smov [#allocation3]   ;;  %vm471_vm9 = vcmask 261120  }
   0x9   :  { %s479_s14 = sshll.u32 %s578_s13, 4  ;;  %s480_s14 = int_to_ptr.vmem [resolvable:$true] %s479_s14 }
   0xa   :  { %vm131_vm5 = vcmp.ge.s32.totalorder %v123_v14, 2  ;;  %vm132_vm8 = vcmp.lt.s32.totalorder %v123_v14, 14  ;;  %s548_s15 = scalar_lea.vmem %s480_s14, 256  ;;  %p553_p1 = scmp.lt.s32.totalorder %s480_s14, %s480_s14 }
   0xb   :  { %p549_p0 = scmp.ne.s32.totalorder %s480_s14, %s548_s15  ;;  %p554_p2 = scmp.lt.s32.totalorder %s548_s15, %s548_s15 }
   0xd   :  { %p555_p3 = por %p554_p2, %p553_p1 }
   0xf   :  { %p556_p4 = pnand %p555_p3, %p549_p0 }
  0x85   :  { %v30_v5 = vpop.permute.xlu0 %29 }
  0xd8   :  { %v102_v6 = vpop.f32.mrb[0].mxu0 }
  0xd9   :  { %v103_v7 = vadd.f32 %v102_v6, %v30_v5  ;;  %v517_v8 = vpop.f32.mrb[1].mxu0 }
  0xdb   :  { %v106_v9 = vmax.f32 %v103_v7, 0.0 }
  0xdd   :  { %112 = vrot.lane.b32.xlu0 %v106_v9, %s575_s0 }
  0xe1   :  { %380 = vperm.xlu0 %547, %v377_v10  }
 0x14f   :  { %v113_v13 = vpop.permute.xlu0 %112 }
 0x150   :  { %116 = vst.msk [vmem:[#allocation2] sm:$0xf] %vm115_vm4, %v113_v13 }
 0x157   :  { %v133_v15 = vld [vmem:[#allocation2] sm:$0xf] }
 0x158   :  { %143 = vrot.lane.b32.xlu1 %v133_v15, %s576_s29  ;;  %v134_v17 = vsel %vm131_vm5, %v133_v15, 0.0 }
 0x159   :  { %524 = vmatpush3.msk.msra.mxu0 %vm149_vm6, %v134_v17 }
 0x15a   :  { %526 = vmatmul.mubr.msk.f32.vlgmr.msra.gmra.mrb[2].mxu0 %vm145_vm7, %v140_v16 }
 0x15b   :  { %535 = vmatprep.mubr.msk.f32.mxu0 %vm145_vm7, %v385_v23 }
 0x15c   :  { %136 = vrot.lane.b32.xlu1 %v133_v15, %s577_s4 }
 0x160   :  { %v381_v32 = vpop.permute.xlu0 %380 }
 0x1ca   :  { %v144_v19 = vpop.permute.xlu1 %143 }
 0x1cb   :  { %519 = vmatpush3.msk.msra.mxu1 %vm149_vm6, %v144_v19 }
 0x1cc   :  { %521 = vmatmul.mubr.msk.f32.vlgmr.msra.gmra.mrb[0].mxu1 %vm145_vm7, %v491_v18  ;;  %528 = vmatprep.subr.mxu1 %v572_v2 }
 0x1cd   :  { %530 = vmatprep.mubr.msk.f32.mxu1 %vm573_vm1, %v572_v2 }
 0x1ce   :  { %v137_v20 = vpop.permute.xlu1 %136 }
 0x1cf   :  { %v139_v22 = vsel %vm132_vm8, %v137_v20, 0.0 }
 0x1d0   :  { %529 = vmatpush3.msk.msra.mxu1 %vm149_vm6, %v139_v22 }
 0x1d1   :  { %531 = vmatmul.mubr.msk.f32.vlgmr.msra.gmra.mrb[2].mxu1 %vm145_vm7, %v496_v21 }
 0x22d   :  { %v294_v24 = vpop.f32.mrb[2].mxu0 }
 0x22e   :  { %v527_v25 = vpop.f32.mrb[3].mxu0 }
 0x29f   :  { %v218_v26 = vpop.f32.mrb[0].mxu1 }
 0x2a0   :  { %v522_v27 = vpop.f32.mrb[1].mxu1  ;;  %v295_v28 = vadd.f32 %v294_v24, %v218_v26 }
 0x2a4   :  { %v372_v29 = vpop.f32.mrb[2].mxu1 }
 0x2a5   :  { %v376_v30 = vadd.f32 %v372_v29, %v295_v28  ;;  %v532_v31 = vpop.f32.mrb[3].mxu1 }
 0x2a7   :  { %v383_v33 = vadd.f32 %v381_v32, %v376_v30 }
 0x2a9   :  { %v384_v34 = vmax.f32 %v383_v33, 0.0 }
 0x2ab   :  { %533 = vmatprep.subr.msk.mxu0 %vm149_vm6, %v384_v34 }
 0x2ac   :  { %534 = vmatpush3.msk.msra.mxu0 %vm149_vm6, %v384_v34 }
 0x2ad   :  { %536 = vmatmul.mubr.msk.f32.vlgmr.msra.gmra.mrb[4].mxu0 %vm145_vm7, %v386_v35 }
 0x380   :  { %v537_v36 = vpop.f32.mrb[4].mxu0 }
 0x381   :  { %473 = vst.msk [vmem:[#allocation3 + $0x8] sm:$0xff] %vm471_vm9, %v537_v36  ;;  %v462_v37 = vpop.f32.mrb[5].mxu0 }
 0x382   :  { %472 = vst.msk [vmem:[#allocation3] sm:$0xff] %vm471_vm9, %v462_v37 }
 0x383   :  { %559 = shalt.err (!%p556_p4)
}
 0x384   :  { %s560_s17 = scalar_lea.hbm %s675_s6, 256 }
 0x385   :  { %p561_p5 = scmp.ne.s32.totalorder %s675_s6, %s560_s17  ;;  %p564_p6 = scmp.lt.u32.totalorder %s560_s17, %s675_s6 }
 0x387   :  { %p566_p7 = pnand %p564_p6, %p561_p5 }
 0x389   :  { %569 = shalt.err (!%p566_p7)
}
 0x38a   :  { %s579_s22 = smov 128   ;;  %s580_s23 = smov 8  }
 0x38b   :  { %485 = dma.vmem_to_hbm [thread:$0]  %s480_s14, 256, %s675_s6, [#allocation4], %s579_s22, %s579_s22, %s580_s23  }
 0x38c   :  { %570 = dma.done.wait [#allocation4], 256  }
 0x38d   :  { %571 = vsyncadd [#allocation4], 4294967040 }
 0x38e   :  { %489 = vsyncpa [#allocation4], 1 }

</bundles_post_ra>
